<compile_context>
chip_gen: v5e
topology: v5e:2x2
jax: 0.10.0
libtpu: 0.0.40
codegen_flags: <defaults>
</compile_context>

<pallas_src>
import jax
import jax.numpy as jnp
from jax.experimental import pallas as pl
from jax.experimental.pallas import tpu as pltpu

CODES = {'A': 0, 'T': 3, 'G': 1, 'C': 2, 'N': 4}


def n2id(n: str) -> int:
    return CODES[n.upper()]


SUB = 8                     # sequence positions folded onto the sublane axis
LANE_TILE_MAX = 8192        # max folded-lane tile (multiple of 128)
OUT_BLOCK_BUDGET = 4 << 20  # ~4 MiB of f32 output per grid step
TB_MAX = 256                # max sequences per grid step


def _cdiv(a: int, b: int) -> int:
    return -(-a // b)


def _round_up(x: int, m: int) -> int:
    return _cdiv(x, m) * m


def seq2tensor_kernel(ids_ref, out_ref):
    # ids_ref: (TB, SUB, TL) integer nucleotide codes (any int dtype)
    # out_ref: (TB, 4, SUB, TL) float32 channel-major one-hot (N rows -> 0.25)
    ids = ids_ref[...].astype(jnp.int32)        # upcast in-register
    is_n = ids == 4                             # computed once, reused 4x
    quarter = jnp.float32(0.25)
    for c in range(4):                          # unrolled per-channel store
        out_ref[:, c, :, :] = jnp.where(
            is_n, quarter, (ids == c).astype(jnp.float32))


def seq2tensor_batch(ids: jax.Array) -> jax.Array:
    """ids: int[B, L] codes (A=0,G=1,C=2,T=3,N=4) -> float32[B, 4, L]."""
    B, L = ids.shape
    if not jnp.issubdtype(ids.dtype, jnp.integer):
        ids = ids.astype(jnp.int32)

    # ---- fold L onto sublanes: L -> (SUB, Lf) -------------------------------
    lf_raw = _cdiv(L, SUB)
    if lf_raw <= LANE_TILE_MAX:
        nl, tl, lf = 1, lf_raw, lf_raw          # single full-axis lane block
    else:
        nl = _cdiv(lf_raw, LANE_TILE_MAX)
        tl = _round_up(_cdiv(lf_raw, nl), 128)  # round only to 128, not tile size
        lf = tl * nl

    # ---- batch tile: keep each step's output block near OUT_BLOCK_BUDGET ----
    out_bytes_per_seq = 4 * SUB * tl * 4        # f32 output bytes per sequence/step
    tb_cap = max(1, min(TB_MAX, OUT_BLOCK_BUDGET // out_bytes_per_seq))
    tb = min(B, tb_cap)
    nb = _cdiv(B, tb)
    if nb * nl == 1 and B >= 2:                 # expose >=2 blocks for v7x's 2 TCs
        nb = 2
    tb = _cdiv(B, nb)                           # rebalance; padding < nb sequences
    bp = tb * nb
    lp = lf * SUB

    pad_b, pad_l = bp - B, lp - L
    if pad_b or pad_l:
        ids = jnp.pad(ids, ((0, pad_b), (0, pad_l)), constant_values=4)
    ids_f = ids.reshape(bp, SUB, lf)            # free row-major reshape

    out = pl.pallas_call(
        seq2tensor_kernel,
        out_shape=jax.ShapeDtypeStruct((bp, 4, SUB, lf), jnp.float32),
        grid_spec=pltpu.PrefetchScalarGridSpec(
            num_scalar_prefetch=0,
            grid=(nb, nl),
            in_specs=[pl.BlockSpec((tb, SUB, tl), lambda b, j: (b, 0, j))],
            out_specs=pl.BlockSpec((tb, 4, SUB, tl), lambda b, j: (b, 0, 0, j)),
        ),
        compiler_params=pltpu.CompilerParams(
            dimension_semantics=("parallel", "parallel")),
    )(ids_f)

    out = out.reshape(bp, 4, lp)                # free reshape back
    if pad_b or pad_l:
        out = out[:B, :, :L]
    return out


def seq2tensor(ids: jax.Array) -> jax.Array:
    """ids: int[L] -> float32[4, L] (matches Seq2Tensor.forward for one sequence)."""
    return seq2tensor_batch(ids[None])[0]


def seq2tensor_ref(ids: jax.Array) -> jax.Array:
    """Pure-JAX reference mirroring the PyTorch forward (supports leading batch)."""
    code = jax.nn.one_hot(ids, 5, dtype=jnp.float32)            # (..., L, 5)
    is_n = code[..., 4] == 1.0
    code = jnp.where(is_n[..., None], jnp.float32(0.25), code)  # whole row -> 0.25
    code = code[..., :4]                                        # drop N column
    return jnp.swapaxes(code, -1, -2)                           # (..., 4, L)


if __name__ == "__main__":
    key = jax.random.PRNGKey(0)

    # Small batched example: B=2 sequences of length 16, int8 codes in [0, 5).
    B, L = 2, 16
    ids = jax.random.randint(key, (B, L), 0, 5, dtype=jnp.int32).astype(jnp.int8)

    out = jax.block_until_ready(seq2tensor_batch(ids))
    ref = seq2tensor_ref(ids.astype(jnp.int32))
    assert out.shape == (B, 4, L), out.shape
    assert out.dtype == jnp.float32, out.dtype
    assert jnp.allclose(out, ref), (out, ref)

    # String path (the original module takes a str) through the single-seq wrapper.
    seq = "ACGTNACGTNACGTNA"
    ids_str = jnp.array([n2id(c) for c in seq], dtype=jnp.int8)
    out_str = jax.block_until_ready(seq2tensor(ids_str))
    assert out_str.shape == (4, len(seq))
    assert jnp.allclose(out_str, seq2tensor_ref(ids_str.astype(jnp.int32)))

    # int32 input + length not a multiple of 8 exercises padding / slicing.
    ids2 = jax.random.randint(jax.random.PRNGKey(1), (3, 13), 0, 5, dtype=jnp.int32)
    out2 = jax.block_until_ready(seq2tensor_batch(ids2))
    assert out2.shape == (3, 4, 13)
    assert jnp.allclose(out2, seq2tensor_ref(ids2))

    # Odd batch exercises the batch-tile rebalance + batch padding path.
    ids3 = jax.random.randint(jax.random.PRNGKey(2), (5, 24), 0, 5,
                              dtype=jnp.int32).astype(jnp.int8)
    out3 = jax.block_until_ready(seq2tensor_batch(ids3))
    assert out3.shape == (5, 4, 24)
    assert jnp.allclose(out3, seq2tensor_ref(ids3.astype(jnp.int32)))

    print("KERNEL_OK")
</pallas_src>

<mosaic_0001>
module attributes {stable_mosaic.version = 11 : i64} {
  func.func @seq2tensor_kernel(%arg0: i32, %arg1: i32, %arg2: memref<1x8x2xi8, #tpu.memory_space<vmem>>, %arg3: memref<1x4x8x2xf32, #tpu.memory_space<vmem>>) attributes {dimension_semantics = [#tpu.dimension_semantics<parallel>, #tpu.dimension_semantics<parallel>], iteration_bounds = array<i64: 2, 1>, scalar_prefetch = 0 : i64, scratch_operands = 0 : i64, tpu.core_type = #tpu.core_type<tc>, window_params = [{transform_indices = @transform_0, window_bounds = array<i64: 1, 8, 2>}, {transform_indices = @transform_1, window_bounds = array<i64: 1, 4, 8, 2>}]} {
    %c0 = arith.constant 0 : index
    %c0_0 = arith.constant 0 : index
    %c0_1 = arith.constant 0 : index
    %0 = vector.load %arg2[%c0, %c0_0, %c0_1] : memref<1x8x2xi8, #tpu.memory_space<vmem>>, vector<1x8x2xi8>
    %1 = arith.extsi %0 : vector<1x8x2xi8> to vector<1x8x2xi32>
    %c4_i32 = arith.constant 4 : i32
    %2 = vector.broadcast %c4_i32 : i32 to vector<1x8x2xi32>
    %3 = arith.cmpi eq, %1, %2 : vector<1x8x2xi32>
    %c0_i32 = arith.constant 0 : i32
    %4 = vector.broadcast %c0_i32 : i32 to vector<1x8x2xi32>
    %5 = arith.cmpi eq, %1, %4 : vector<1x8x2xi32>
    %6 = arith.extui %5 : vector<1x8x2xi1> to vector<1x8x2xi32>
    %7 = arith.sitofp %6 : vector<1x8x2xi32> to vector<1x8x2xf32>
    %cst = arith.constant 2.500000e-01 : f32
    %8 = vector.broadcast %cst : f32 to vector<1x8x2xf32>
    %9 = arith.select %3, %8, %7 : vector<1x8x2xi1>, vector<1x8x2xf32>
    %c0_2 = arith.constant 0 : index
    %c0_3 = arith.constant 0 : index
    %c0_4 = arith.constant 0 : index
    %c0_5 = arith.constant 0 : index
    %10 = vector.load %arg3[%c0_2, %c0_3, %c0_4, %c0_5] : memref<1x4x8x2xf32, #tpu.memory_space<vmem>>, vector<1x1x8x2xf32>
    %11 = vector.shape_cast %10 : vector<1x1x8x2xf32> to vector<1x8x2xf32>
    %12 = vector.shape_cast %9 : vector<1x8x2xf32> to vector<1x1x8x2xf32>
    tpu.vector_store %arg3[%c0_2, %c0_3, %c0_4, %c0_5], %12 {strides = array<i32>} : memref<1x4x8x2xf32, #tpu.memory_space<vmem>>, vector<1x1x8x2xf32>,
    %c1_i32 = arith.constant 1 : i32
    %13 = vector.broadcast %c1_i32 : i32 to vector<1x8x2xi32>
    %14 = arith.cmpi eq, %1, %13 : vector<1x8x2xi32>
    %15 = arith.extui %14 : vector<1x8x2xi1> to vector<1x8x2xi32>
    %16 = arith.sitofp %15 : vector<1x8x2xi32> to vector<1x8x2xf32>
    %cst_6 = arith.constant 2.500000e-01 : f32
    %17 = vector.broadcast %cst_6 : f32 to vector<1x8x2xf32>
    %18 = arith.select %3, %17, %16 : vector<1x8x2xi1>, vector<1x8x2xf32>
    %c0_7 = arith.constant 0 : index
    %c1 = arith.constant 1 : index
    %c0_8 = arith.constant 0 : index
    %c0_9 = arith.constant 0 : index
    %19 = vector.load %arg3[%c0_7, %c1, %c0_8, %c0_9] : memref<1x4x8x2xf32, #tpu.memory_space<vmem>>, vector<1x1x8x2xf32>
    %20 = vector.shape_cast %19 : vector<1x1x8x2xf32> to vector<1x8x2xf32>
    %21 = vector.shape_cast %18 : vector<1x8x2xf32> to vector<1x1x8x2xf32>
    tpu.vector_store %arg3[%c0_7, %c1, %c0_8, %c0_9], %21 {strides = array<i32>} : memref<1x4x8x2xf32, #tpu.memory_space<vmem>>, vector<1x1x8x2xf32>,
    %c2_i32 = arith.constant 2 : i32
    %22 = vector.broadcast %c2_i32 : i32 to vector<1x8x2xi32>
    %23 = arith.cmpi eq, %1, %22 : vector<1x8x2xi32>
    %24 = arith.extui %23 : vector<1x8x2xi1> to vector<1x8x2xi32>
    %25 = arith.sitofp %24 : vector<1x8x2xi32> to vector<1x8x2xf32>
    %cst_10 = arith.constant 2.500000e-01 : f32
    %26 = vector.broadcast %cst_10 : f32 to vector<1x8x2xf32>
    %27 = arith.select %3, %26, %25 : vector<1x8x2xi1>, vector<1x8x2xf32>
    %c0_11 = arith.constant 0 : index
    %c2 = arith.constant 2 : index
    %c0_12 = arith.constant 0 : index
    %c0_13 = arith.constant 0 : index
    %28 = vector.load %arg3[%c0_11, %c2, %c0_12, %c0_13] : memref<1x4x8x2xf32, #tpu.memory_space<vmem>>, vector<1x1x8x2xf32>
    %29 = vector.shape_cast %28 : vector<1x1x8x2xf32> to vector<1x8x2xf32>
    %30 = vector.shape_cast %27 : vector<1x8x2xf32> to vector<1x1x8x2xf32>
    tpu.vector_store %arg3[%c0_11, %c2, %c0_12, %c0_13], %30 {strides = array<i32>} : memref<1x4x8x2xf32, #tpu.memory_space<vmem>>, vector<1x1x8x2xf32>,
    %c3_i32 = arith.constant 3 : i32
    %31 = vector.broadcast %c3_i32 : i32 to vector<1x8x2xi32>
    %32 = arith.cmpi eq, %1, %31 : vector<1x8x2xi32>
    %33 = arith.extui %32 : vector<1x8x2xi1> to vector<1x8x2xi32>
    %34 = arith.sitofp %33 : vector<1x8x2xi32> to vector<1x8x2xf32>
    %cst_14 = arith.constant 2.500000e-01 : f32
    %35 = vector.broadcast %cst_14 : f32 to vector<1x8x2xf32>
    %36 = arith.select %3, %35, %34 : vector<1x8x2xi1>, vector<1x8x2xf32>
    %c0_15 = arith.constant 0 : index
    %c3 = arith.constant 3 : index
    %c0_16 = arith.constant 0 : index
    %c0_17 = arith.constant 0 : index
    %37 = vector.load %arg3[%c0_15, %c3, %c0_16, %c0_17] : memref<1x4x8x2xf32, #tpu.memory_space<vmem>>, vector<1x1x8x2xf32>
    %38 = vector.shape_cast %37 : vector<1x1x8x2xf32> to vector<1x8x2xf32>
    %39 = vector.shape_cast %36 : vector<1x8x2xf32> to vector<1x1x8x2xf32>
    tpu.vector_store %arg3[%c0_15, %c3, %c0_16, %c0_17], %39 {strides = array<i32>} : memref<1x4x8x2xf32, #tpu.memory_space<vmem>>, vector<1x1x8x2xf32>,
    return
  }
  func.func @transform_0(%arg0: i32, %arg1: i32) -> (i32, i32, i32) {
    %c0_i32 = arith.constant 0 : i32
    %c0_i32_0 = arith.constant 0 : i32
    return %arg0, %c0_i32, %arg1 : i32, i32, i32
  }
  func.func @transform_1(%arg0: i32, %arg1: i32) -> (i32, i32, i32, i32) {
    %c0_i32 = arith.constant 0 : i32
    %c0_i32_0 = arith.constant 0 : i32
    %c0_i32_1 = arith.constant 0 : i32
    return %arg0, %c0_i32, %c0_i32_0, %arg1 : i32, i32, i32, i32
  }
}

</mosaic_0001>

<bundles_post_ra>
// kernel: tpu_custom_call.1
= control target key start
LH: loop header
LB: loop body
LE: loop exit
PB: predicated region body
PF: predicated region fallthrough
CT: control target
= control target key end

     0   :  { %s330_s6 = smov 0   ;;  %s332_s7 = smov 0   ;;  %s367_s0 = inlined_call_operand.vmem [shape: s8[2,8,2], index: 0, kind: input, shape index: {}]   ;;  %s368_s1 = inlined_call_operand.vmem [shape: f32[2,4,8,2], index: 1, kind: output, shape index: {}]  }
   0x1   :  { %s334_s8 = smov 0  }
   0x2 LB: > { %s23_s9 = sadd.s32 1, %s313_s7  ;;  %p256_p0 = scmp.ge.s32.totalorder %s317_s8, 1  ;;  %s317_s8 = sphi %s334_s8, %s11_s8   ;;  %s313_s7 = sphi %s332_s7, %s370_s7   ;;  %s309_s6 = sphi %s330_s6, %s369_s6  }
   0x3   : > { %p25_p1 = scmp.ge.s32.totalorder %s23_s9, 2  ;;  %p105_p2 = scmp.lt.s32.totalorder %s317_s8, 3 }
   0x5   : > { %s372_s9 = smov (%p25_p1, %s23_s9), 0  ;;  %p106_p3 = pnand %p256_p0, %p105_p2 }
   0x6   : > { %p130_p4 = scmp.lt.s32.totalorder (!%p106_p3), %s309_s6, 1 }
   0x7   : > { %109 = sbr.rel (%p106_p3) target bundleno = 25 (0x19), region = 24 }
   0xc   : > { %s374_s6 = smov (!%p130_p4, %s309_s6), 1  ;;  %vm152_vm0 = vcmask 15360   ;;  %v319_v2 = vmov 0.0  }
   0xd   : > { %s257_s10 = sshll.u32 %s374_s6, 1  ;;  %s269_s14 = sshll.u32 %s374_s6, 5 }
   0xe   : > { %s136_s13 = scalar_lea.vmem %s367_s0, %s257_s10  ;;  %s144_s17 = scalar_lea.vmem %s368_s1, %s269_s14 }
   0xf   : > { %v145_v0 = vld [vmem:[%s136_s13] sm:$0x3] }
  0x10   : > { %v146_v1 = vunpack.c.0.s8 %v145_v0 }
  0x12   : > { %vm147_vm1 = vcmp.eq.s32.totalorder %v146_v1, 4  ;;  %vm148_vm2 = vcmp.eq.s32.totalorder %v146_v1, 0  ;;  %vm154_vm3 = vcmp.eq.s32.totalorder %v146_v1, 1  ;;  %vm160_vm4 = vcmp.eq.s32.totalorder %v146_v1, 2 }
  0x13   : > { %v260_v3 = vsel %vm148_vm2, 1.0, %v319_v2  ;;  %v261_v4 = vsel %vm154_vm3, 1.0, %v319_v2  ;;  %v263_v5 = vsel %vm160_vm4, 1.0, %v319_v2  ;;  %vm166_vm5 = vcmp.eq.s32.totalorder %v146_v1, 3 }
  0x14   : > { %v151_v6 = vsel %vm147_vm1, 0.25, %v260_v3  ;;  %v157_v7 = vsel %vm147_vm1, 0.25, %v261_v4  ;;  %v163_v8 = vsel %vm147_vm1, 0.25, %v263_v5  ;;  %v265_v9 = vsel %vm166_vm5, 1.0, %v319_v2 }
  0x15   : > { %153 = vst.msk [vmem:[%s144_s17] sm:$0xff] %vm152_vm0, %v151_v6  ;;  %v169_v10 = vsel %vm147_vm1, 0.25, %v265_v9 }
  0x16   : > { %262 = vst.msk [vmem:[%s144_s17 + $0x8] sm:$0xff] %vm152_vm0, %v157_v7 }
  0x17   : > { %264 = vst.msk [vmem:[%s144_s17 + $0x10] sm:$0xff] %vm152_vm0, %v163_v8 }
  0x18   : > { %266 = vst.msk [vmem:[%s144_s17 + $0x18] sm:$0xff] %vm152_vm0, %v169_v10 }
  0x19 PF: > { %s11_s8 = sadd.s32 1, %s317_s8   ;;  %s369_s6 = smov %s313_s7 }
  0x1a   : > { %p8_p5 = scmp.ge.s32.totalorder %s11_s8, 4   ;;  %s370_s7 = smov %s372_s9 }
  0x1c   :  { %10 = sbr.rel (!%p8_p5) target bundleno = 2 (0x2), region = 57 }

</bundles_post_ra>
